<compile_context>
chip_gen: v6e
topology: v6e:2x2x1
jax: 0.10.0
libtpu: 0.0.40
codegen_flags: <defaults>
</compile_context>

<pallas_src>
import math
import functools

import jax
import jax.numpy as jnp
from jax import lax
from jax.experimental import pallas as pl
from jax.experimental.pallas import tpu as pltpu


def _hash_u32(x):
    """lowbias32-style avalanche hash on uint32 arrays (portable, VPU-only)."""
    x = (x ^ (x >> 16)) * jnp.uint32(0x7FEB352D)
    x = (x ^ (x >> 15)) * jnp.uint32(0x846CA68B)
    x = x ^ (x >> 16)
    return x


def _pe_dropout_kernel(seed_ref, x_ref, pe_ref, o_ref, *, p: float, train: bool):
    # x_ref : (TS, B, E) tile of token_embedding
    # pe_ref: (TS, 1, E) matching rows of the positional table
    s = x_ref[...] + pe_ref[...]                 # broadcast add over batch axis

    if (not train) or p <= 0.0:
        o_ref[...] = s.astype(o_ref.dtype)
        return
    if p >= 1.0:                                 # degenerate: drop everything
        o_ref[...] = jnp.zeros_like(s).astype(o_ref.dtype)
        return

    ts, b, e = s.shape
    # Per-element counter within the tile (>=2-D iota as required on TPU).
    i0 = lax.broadcasted_iota(jnp.uint32, (ts, b, e), 0)
    i1 = lax.broadcasted_iota(jnp.uint32, (ts, b, e), 1)
    i2 = lax.broadcasted_iota(jnp.uint32, (ts, b, e), 2)
    ctr = i0 * jnp.uint32(b * e) + i1 * jnp.uint32(e) + i2
    # Per-tile salt from the user seed and the grid position (decorrelates
    # masks across tiles; hash gives good avalanche on the low-bit counters).
    salt = (seed_ref[0].astype(jnp.uint32) * jnp.uint32(0x9E3779B9)
            + pl.program_id(0).astype(jnp.uint32) * jnp.uint32(0x85EBCA6B))
    bits = _hash_u32(ctr ^ salt)

    # Integer threshold compare: drop with probability ~p, no float convert.
    thr = jnp.uint32(min(int(round(p * 4294967296.0)), 4294967295))
    keep = bits >= thr
    scale = jnp.float32(1.0 / (1.0 - p))
    o_ref[...] = jnp.where(keep, s * scale, jnp.zeros_like(s)).astype(o_ref.dtype)


def make_positional_table(embedding_size: int, maxlen: int = 6000) -> jnp.ndarray:
    """Pure-JAX glue: sin/cos positional table, shape (maxlen, 1, E)."""
    den = jnp.exp(-jnp.arange(0, embedding_size, 2, dtype=jnp.float32)
                  * (math.log(10000.0) / embedding_size))
    pos = jnp.arange(0, maxlen, dtype=jnp.float32).reshape(maxlen, 1)
    pe = jnp.zeros((maxlen, embedding_size), dtype=jnp.float32)
    pe = pe.at[:, 0::2].set(jnp.sin(pos * den))
    pe = pe.at[:, 1::2].set(jnp.cos(pos * den))
    return pe[:, None, :]                        # (maxlen, 1, E)


def positional_encoding(token_embedding: jnp.ndarray,
                        embedding_pos: jnp.ndarray,
                        *,
                        p: float = 0.1,
                        train: bool = False,
                        seed: int = 0,
                        tile_bytes: int = 2 * 1024 * 1024) -> jnp.ndarray:
    """token_embedding: (S, B, E); embedding_pos: (maxlen, 1, E), S <= maxlen."""
    S, B, E = token_embedding.shape
    maxlen = embedding_pos.shape[0]
    assert embedding_pos.shape == (maxlen, 1, E)
    assert S <= maxlen

    # Tile TS sequence rows per grid step so the x tile is ~tile_bytes
    # (~2 MiB). With double-buffered x-in / pe-in / out, the VMEM footprint
    # stays well under the 16 MiB scoped default on v5e (and 32 MiB on v7x).
    bytes_per_row = B * E * token_embedding.dtype.itemsize
    TS = max(1, min(S, tile_bytes // max(1, bytes_per_row)))
    grid = (pl.cdiv(S, TS),)

    kernel = functools.partial(_pe_dropout_kernel, p=float(p), train=bool(train))
    seed_arr = jnp.array([seed], dtype=jnp.int32)

    return pl.pallas_call(
        kernel,
        out_shape=jax.ShapeDtypeStruct((S, B, E), token_embedding.dtype),
        grid_spec=pltpu.PrefetchScalarGridSpec(
            num_scalar_prefetch=1,
            grid=grid,
            in_specs=[
                # x tile: TS rows, full (B, E) in the last two dims.
                pl.BlockSpec((TS, B, E), lambda i, seed: (i, 0, 0)),
                # PE tile: same TS rows, sliced straight out of the full
                # (maxlen, 1, E) table via the index_map (no wrapper slice).
                pl.BlockSpec((TS, 1, E), lambda i, seed: (i, 0, 0)),
            ],
            out_specs=pl.BlockSpec((TS, B, E), lambda i, seed: (i, 0, 0)),
        ),
        compiler_params=pltpu.CompilerParams(
            # No cross-iteration dependency along S: let v7x shard across TCs.
            dimension_semantics=("parallel",),
        ),
    )(seed_arr, token_embedding, embedding_pos)


if __name__ == "__main__":
    # Small shapes consistent with the module's forward: (seq, batch, embed)
    S, B, E = 8, 2, 32
    maxlen = 64

    key = jax.random.PRNGKey(0)
    x = jax.random.normal(key, (S, B, E), dtype=jnp.float32)

    pe_table = make_positional_table(E, maxlen)

    # Eval mode (dropout is identity): exact check vs pure-JAX reference.
    y_eval = jax.block_until_ready(positional_encoding(x, pe_table, p=0.1, train=False))
    ref = x + pe_table[:S]
    assert jnp.allclose(y_eval, ref, atol=1e-6), "eval-mode mismatch"

    # Train mode: in-kernel deterministic dropout (inverted, scale 1/(1-p)).
    p = 0.1
    y_train = jax.block_until_ready(
        positional_encoding(x, pe_table, p=p, train=True, seed=123))
    assert y_train.shape == (S, B, E)
    scaled = ref / (1.0 - p)
    dropped = (y_train == 0.0)
    # Every element must be either 0 (dropped) or the correctly scaled value.
    assert jnp.allclose(jnp.where(dropped, scaled, y_train), scaled, atol=1e-5), \
        "train-mode kept values mismatch"

    print("KERNEL_OK")
</pallas_src>

<mosaic_0001>
module attributes {stable_mosaic.version = 11 : i64} {
  func.func @_pe_dropout_kernel(%arg0: i32, %arg1: memref<1xi32, #tpu.memory_space<smem>>, %arg2: memref<8x2x32xf32, #tpu.memory_space<vmem>>, %arg3: memref<8x1x32xf32, #tpu.memory_space<vmem>>, %arg4: memref<8x2x32xf32, #tpu.memory_space<vmem>>) attributes {dimension_semantics = [#tpu.dimension_semantics<parallel>], iteration_bounds = array<i64: 1>, scalar_prefetch = 1 : i64, scratch_operands = 0 : i64, tpu.core_type = #tpu.core_type<tc>, window_params = [{transform_indices = @transform_0, window_bounds = array<i64: 8, 2, 32>}, {transform_indices = @transform_1, window_bounds = array<i64: 8, 1, 32>}, {transform_indices = @transform_2, window_bounds = array<i64: 8, 2, 32>}]} {
    %c0 = arith.constant 0 : index
    %c0_0 = arith.constant 0 : index
    %c0_1 = arith.constant 0 : index
    %0 = vector.load %arg2[%c0, %c0_0, %c0_1] : memref<8x2x32xf32, #tpu.memory_space<vmem>>, vector<8x2x32xf32>
    %c0_2 = arith.constant 0 : index
    %c0_3 = arith.constant 0 : index
    %c0_4 = arith.constant 0 : index
    %1 = vector.load %arg3[%c0_2, %c0_3, %c0_4] : memref<8x1x32xf32, #tpu.memory_space<vmem>>, vector<8x1x32xf32>
    %2 = vector.broadcast %1 : vector<8x1x32xf32> to vector<8x2x32xf32>
    %3 = arith.addf %0, %2 : vector<8x2x32xf32>
    %c0_5 = arith.constant 0 : index
    %c0_6 = arith.constant 0 : index
    %c0_7 = arith.constant 0 : index
    %4 = vector.load %arg4[%c0_5, %c0_6, %c0_7] : memref<8x2x32xf32, #tpu.memory_space<vmem>>, vector<8x2x32xf32>
    tpu.vector_store %arg4[%c0_5, %c0_6, %c0_7], %3 {strides = array<i32>} : memref<8x2x32xf32, #tpu.memory_space<vmem>>, vector<8x2x32xf32>,
    return
  }
  func.func @transform_0(%arg0: i32, %arg1: memref<1xi32, #tpu.memory_space<smem>>) -> (i32, i32, i32) {
    %c0_i32 = arith.constant 0 : i32
    %c0_i32_0 = arith.constant 0 : i32
    %c0_i32_1 = arith.constant 0 : i32
    return %arg0, %c0_i32, %c0_i32_0 : i32, i32, i32
  }
  func.func @transform_1(%arg0: i32, %arg1: memref<1xi32, #tpu.memory_space<smem>>) -> (i32, i32, i32) {
    %c0_i32 = arith.constant 0 : i32
    %c0_i32_0 = arith.constant 0 : i32
    %c0_i32_1 = arith.constant 0 : i32
    return %arg0, %c0_i32, %c0_i32_0 : i32, i32, i32
  }
  func.func @transform_2(%arg0: i32, %arg1: memref<1xi32, #tpu.memory_space<smem>>) -> (i32, i32, i32) {
    %c0_i32 = arith.constant 0 : i32
    %c0_i32_0 = arith.constant 0 : i32
    %c0_i32_1 = arith.constant 0 : i32
    return %arg0, %c0_i32, %c0_i32_0 : i32, i32, i32
  }
}

</mosaic_0001>

<bundles_post_ra>
// kernel: tpu_custom_call.1
= control target key start
LH: loop header
LB: loop body
LE: loop exit
PB: predicated region body
PF: predicated region fallthrough
CT: control target
= control target key end

     0   :  { %vm86_vm0 = vcmask 254976   ;;  %s226_s0 = inlined_call_operand.<no memory space> [shape: s32[1], index: 0, kind: input, shape index: {}]   ;;  %s227_s1 = inlined_call_operand.vmem [shape: f32[8,2,32], index: 1, kind: input, shape index: {}]   ;;  %s228_s2 = inlined_call_operand.vmem [shape: f32[64,1,32], index: 2, kind: input, shape index: {}]   ;;  %s229_s3 = inlined_call_operand.hbm [shape: f32[8,2,32], index: 3, kind: output, shape index: {}]  }
   0x1   :  { %v14_v0 = vld [vmem:[%s227_s1] sm:$0x3]  ;;  %v15_v3 = vld [vmem:[%s227_s1 + $0x2] sm:$0x3]  ;;  %v16_v5 = vld [vmem:[%s227_s1 + $0x4] sm:$0x3] }
   0x2   :  { %v111_v1 = vld [vmem:[%s228_s2] ss:$0 sm:$0xff]  ;;  %v112_v4 = vld [vmem:[%s228_s2 + $0x1] ss:$0 sm:$0xff]  ;;  %v113_v7 = vld [vmem:[%s228_s2 + $0x2] ss:$0 sm:$0xff] }
   0x3   :  { %v78_v2 = vadd.f32 %v111_v1, %v14_v0  ;;  %v79_v6 = vadd.f32 %v112_v4, %v15_v3  ;;  %v17_v8 = vld [vmem:[%s227_s1 + $0x6] sm:$0x3]  ;;  %v114_v9 = vld [vmem:[%s228_s2 + $0x3] ss:$0 sm:$0xff]  ;;  %v80_v10 = vadd.f32 %v113_v7, %v16_v5  ;;  %v18_v12 = vld [vmem:[%s227_s1 + $0x8] sm:$0x3] }
   0x4   :  { %v81_v11 = vadd.f32 %v114_v9, %v17_v8  ;;  %v115_v13 = vld [vmem:[%s228_s2 + $0x4] ss:$0 sm:$0xff]  ;;  %v19_v14 = vld [vmem:[%s227_s1 + $0xa] sm:$0x3]  ;;  %v116_v16 = vld [vmem:[%s228_s2 + $0x5] ss:$0 sm:$0xff] }
   0x5   :  { %87 = vst.msk [vmem:[#allocation4] sm:$0x3] %vm86_vm0, %v78_v2  ;;  %88 = vst.msk [vmem:[#allocation4 + $0x2] sm:$0x3] %vm86_vm0, %v79_v6  ;;  %v82_v15 = vadd.f32 %v115_v13, %v18_v12  ;;  %v20_v17 = vld [vmem:[%s227_s1 + $0xc] sm:$0x3]  ;;  %v83_v19 = vadd.f32 %v116_v16, %v19_v14 }
   0x6   :  { %v117_v18 = vld [vmem:[%s228_s2 + $0x6] ss:$0 sm:$0xff]  ;;  %89 = vst.msk [vmem:[#allocation4 + $0x4] sm:$0x3] %vm86_vm0, %v80_v10  ;;  %90 = vst.msk [vmem:[#allocation4 + $0x6] sm:$0x3] %vm86_vm0, %v81_v11 }
   0x7   :  { %v84_v20 = vadd.f32 %v117_v18, %v20_v17  ;;  %v21_v21 = vld [vmem:[%s227_s1 + $0xe] sm:$0x3]  ;;  %v118_v22 = vld [vmem:[%s228_s2 + $0x7] ss:$0 sm:$0xff] }
   0x8   :  { %9 = vsyncpa [#allocation5], 0  ;;  %91 = vst.msk [vmem:[#allocation4 + $0x8] sm:$0x3] %vm86_vm0, %v82_v15  ;;  %v85_v23 = vadd.f32 %v118_v22, %v21_v21  ;;  %s144_s0 = smov [#allocation4]  }
   0x9   :  { %s100_s16 = sshll.u32 %s144_s0, 4  ;;  %92 = vst.msk [vmem:[#allocation4 + $0xa] sm:$0x3] %vm86_vm0, %v83_v19  ;;  %93 = vst.msk [vmem:[#allocation4 + $0xc] sm:$0x3] %vm86_vm0, %v84_v20  ;;  %s101_s16 = int_to_ptr.vmem [resolvable:$true] %s100_s16 }
   0xa   :  { %94 = vst.msk [vmem:[#allocation4 + $0xe] sm:$0x3] %vm86_vm0, %v85_v23  ;;  %s122_s17 = scalar_lea.vmem %s101_s16, 256  ;;  %p127_p1 = scmp.lt.s32.totalorder %s101_s16, %s101_s16 }
   0xb   :  { %p123_p0 = scmp.ne.s32.totalorder %s101_s16, %s122_s17  ;;  %p128_p2 = scmp.lt.s32.totalorder %s122_s17, %s122_s17 }
   0xd   :  { %p129_p3 = por %p128_p2, %p127_p1 }
   0xf   :  { %p130_p4 = pnand %p129_p3, %p123_p0 }
  0x11   :  { %133 = shalt.err (!%p130_p4)
}
  0x12   :  { %s145_s1 = smov 32   ;;  %s146_s2 = smov 2  }
  0x13   :  { %106 = dma.vmem_to_hbm [thread:$0]  %s101_s16, 256, %s229_s3, [#allocation5], %s145_s1, %s145_s1, %s146_s2  }
  0x14   :  { %142 = dma.done.wait [#allocation5], 256  }
  0x15   :  { %143 = vsyncadd [#allocation5], 4294967040 }
  0x16   :  { %110 = vsyncpa [#allocation5], 1 }

</bundles_post_ra>
